<compile_context>
chip_gen: v5e
topology: v5e:2x2
jax: 0.10.0
libtpu: 0.0.40
codegen_flags: <defaults>
</compile_context>

<pallas_src>
import jax
import jax.numpy as jnp
from jax import lax
from jax.experimental import pallas as pl
from jax.experimental.pallas import tpu as pltpu


def _gather_project_kernel(ids_ref, table_ref, w_ref, out_ref, rows_ref):
    """Gather block_n embedding rows, then project on the MXU.

    ids_ref  : (padded_N,)         int32  SMEM (scalar prefetch)
    table_ref: (n_token, d_embed)  VMEM   resident across the grid
    w_ref    : (d_embed, d_proj)   VMEM   W^T with emb_scale folded in
    out_ref  : (block_n, d_proj)
    rows_ref : (block_n, d_embed)  VMEM scratch for the gathered rows
    """
    i = pl.program_id(0)
    block_n = rows_ref.shape[0]
    base = i * block_n

    def gather_body(r, carry):
        tok = ids_ref[base + r]                                   # scalar (SMEM)
        rows_ref[pl.ds(r, 1), :] = table_ref[pl.ds(tok, 1), :]    # one row copy
        return carry

    lax.fori_loop(0, block_n, gather_body, 0)

    out_ref[...] = jnp.dot(
        rows_ref[...], w_ref[...], preferred_element_type=jnp.float32
    ).astype(out_ref.dtype)


def _gather_kernel(ids_ref, table_ref, out_ref):
    """Pure gather path (d_proj == d_embed; emb_scale pre-folded into table)."""
    i = pl.program_id(0)
    block_n = out_ref.shape[0]
    base = i * block_n

    def gather_body(r, carry):
        tok = ids_ref[base + r]
        out_ref[pl.ds(r, 1), :] = table_ref[pl.ds(tok, 1), :].astype(out_ref.dtype)
        return carry

    lax.fori_loop(0, block_n, gather_body, 0)


def adaptive_embedding(inp, emb_table, proj_w=None, *,
                       block_n=256, compute_dtype=jnp.float32):
    """Forward pass of AdaptiveEmbedding (div_val == 1).

    inp       : (B, S) int32 token ids
    emb_table : (n_token, d_embed) embedding weight (padding row already zeroed)
    proj_w    : (d_proj, d_embed) nn.Linear weight (bias=False), or None when
                d_proj == d_embed (the module adds no Linear in that case).
    block_n   : rows per grid step (128 on v5e, 256-512 on v6e/v7x).
    compute_dtype: jnp.float32 (exact) or jnp.bfloat16 for v6e/v7x MXU speed.
    Returns (B, S, d_proj) float32 == emb_scale * Linear(Embedding(inp)).
    """
    B, S = inp.shape
    n_token, d_embed = emb_table.shape
    d_proj = d_embed if proj_w is None else proj_w.shape[0]
    emb_scale = float(d_proj) ** 0.5

    N = B * S
    num_blocks = (N + block_n - 1) // block_n
    padded_n = num_blocks * block_n
    ids = inp.reshape(-1).astype(jnp.int32)
    if padded_n != N:
        ids = jnp.pad(ids, (0, padded_n - N))   # pad with token 0; rows sliced off below

    out_shape = jax.ShapeDtypeStruct((padded_n, d_proj), jnp.float32)
    compiler_params = pltpu.CompilerParams(dimension_semantics=("parallel",))

    if proj_w is not None:
        # One-time host-side weight transform: fold emb_scale into W^T.
        table = emb_table.astype(compute_dtype)
        w_t = (proj_w.T.astype(jnp.float32) * emb_scale).astype(compute_dtype)
        grid_spec = pltpu.PrefetchScalarGridSpec(
            num_scalar_prefetch=1,
            grid=(num_blocks,),
            in_specs=[
                pl.BlockSpec((n_token, d_embed), lambda i, ids_sm: (0, 0)),  # resident
                pl.BlockSpec((d_embed, d_proj), lambda i, ids_sm: (0, 0)),   # resident
            ],
            out_specs=pl.BlockSpec((block_n, d_proj), lambda i, ids_sm: (i, 0)),
            scratch_shapes=[pltpu.VMEM((block_n, d_embed), compute_dtype)],
        )
        out = pl.pallas_call(
            _gather_project_kernel,
            out_shape=out_shape,
            grid_spec=grid_spec,
            compiler_params=compiler_params,
        )(ids, table, w_t)
    else:
        # No projection layer: fold emb_scale into the table once (host side).
        table = (emb_table.astype(jnp.float32) * emb_scale).astype(compute_dtype)
        grid_spec = pltpu.PrefetchScalarGridSpec(
            num_scalar_prefetch=1,
            grid=(num_blocks,),
            in_specs=[pl.BlockSpec((n_token, d_embed), lambda i, ids_sm: (0, 0))],
            out_specs=pl.BlockSpec((block_n, d_embed), lambda i, ids_sm: (i, 0)),
        )
        out = pl.pallas_call(
            _gather_kernel,
            out_shape=out_shape,
            grid_spec=grid_spec,
            compiler_params=compiler_params,
        )(ids, table)

    return out[:N].reshape(B, S, d_proj)


if __name__ == "__main__":
    # Small shapes consistent with the module's forward pass.
    n_token = 64
    d_embed = 32
    d_proj = 128            # != d_embed -> Linear projection path; lane-dense output
    padding_token_idx = 14
    B, S = 2, 8

    key = jax.random.PRNGKey(0)
    k_emb, k_proj, k_ids, k_emb2 = jax.random.split(key, 4)

    # nn.Embedding ~ N(0,1); padding row zeroed (padding_idx forward semantics).
    emb_table = jax.random.normal(k_emb, (n_token, d_embed), dtype=jnp.float32)
    emb_table = emb_table.at[padding_token_idx].set(0.0)
    # nn.Linear weight (d_proj, d_embed), bias=False.
    proj_w = jax.random.normal(k_proj, (d_proj, d_embed), dtype=jnp.float32) * 0.05

    inp = jax.random.randint(k_ids, (B, S), 0, n_token, dtype=jnp.int32)
    inp = inp.at[0, 0].set(padding_token_idx)

    # --- Path 1: d_proj != d_embed (Embedding -> Linear -> * sqrt(d_proj)) ---
    out = adaptive_embedding(inp, emb_table, proj_w)
    out = jax.block_until_ready(out)
    ref = (emb_table[inp] @ proj_w.T) * (float(d_proj) ** 0.5)
    assert out.shape == (B, S, d_proj)
    assert jnp.allclose(out, ref, atol=1e-4, rtol=1e-4)

    # --- Path 2: d_proj == d_embed (no Linear layer in the module) ---
    d_embed2 = 128
    emb_table2 = jax.random.normal(k_emb2, (n_token, d_embed2), dtype=jnp.float32)
    emb_table2 = emb_table2.at[padding_token_idx].set(0.0)
    out2 = adaptive_embedding(inp, emb_table2, None)
    out2 = jax.block_until_ready(out2)
    ref2 = emb_table2[inp] * (float(d_embed2) ** 0.5)
    assert out2.shape == (B, S, d_embed2)
    assert jnp.allclose(out2, ref2, atol=1e-4, rtol=1e-4)

    print("KERNEL_OK")
</pallas_src>

<mosaic_0001>
module attributes {stable_mosaic.version = 11 : i64} {
  func.func @_gather_project_kernel(%arg0: i32, %arg1: memref<256xi32, #tpu.memory_space<smem>>, %arg2: memref<64x32xf32, #tpu.memory_space<vmem>>, %arg3: memref<32x128xf32, #tpu.memory_space<vmem>>, %arg4: memref<256x128xf32, #tpu.memory_space<vmem>>, %arg5: memref<256x32xf32, #tpu.memory_space<vmem>>) attributes {dimension_semantics = [#tpu.dimension_semantics<parallel>], iteration_bounds = array<i64: 1>, scalar_prefetch = 1 : i64, scratch_operands = 1 : i64, tpu.core_type = #tpu.core_type<tc>, window_params = [{pipeline_mode = #tpu.pipeline_mode<synchronous>, transform_indices = @transform_0, window_bounds = array<i64: 64, 32>}, {pipeline_mode = #tpu.pipeline_mode<synchronous>, transform_indices = @transform_1, window_bounds = array<i64: 32, 128>}, {transform_indices = @transform_2, window_bounds = array<i64: 256, 128>}]} {
    %c256_i32 = arith.constant 256 : i32
    %0 = arith.muli %arg0, %c256_i32 : i32
    %c0_i32 = arith.constant 0 : i32
    %c256_i32_0 = arith.constant 256 : i32
    %1 = arith.addi %c0_i32, %c256_i32_0 : i32
    %c1_i32 = arith.constant 1 : i32
    scf.for %arg6 = %c0_i32 to %1 step %c1_i32  : i32 {
      %6 = arith.addi %0, %arg6 : i32
      %7 = arith.index_cast %6 : i32 to index
      %8 = memref.load %arg1[%7] : memref<256xi32, #tpu.memory_space<smem>>
      %9 = arith.index_cast %8 : i32 to index
      %c0_7 = arith.constant 0 : index
      %10 = vector.load %arg2[%9, %c0_7] : memref<64x32xf32, #tpu.memory_space<vmem>>, vector<1x32xf32>
      %11 = arith.index_cast %arg6 : i32 to index
      %c0_8 = arith.constant 0 : index
      %12 = vector.load %arg5[%11, %c0_8] : memref<256x32xf32, #tpu.memory_space<vmem>>, vector<1x32xf32>
      tpu.vector_store %arg5[%11, %c0_8], %10 {strides = array<i32>} : memref<256x32xf32, #tpu.memory_space<vmem>>, vector<1x32xf32>,
    }
    %c256_i32_1 = arith.constant 256 : i32
    %c0 = arith.constant 0 : index
    %c0_2 = arith.constant 0 : index
    %2 = vector.load %arg5[%c0, %c0_2] : memref<256x32xf32, #tpu.memory_space<vmem>>, vector<256x32xf32>
    %c0_3 = arith.constant 0 : index
    %c0_4 = arith.constant 0 : index
    %3 = vector.load %arg3[%c0_3, %c0_4] : memref<32x128xf32, #tpu.memory_space<vmem>>, vector<32x128xf32>
    %cst = arith.constant dense<0.000000e+00> : vector<256x128xf32>
    %4 = tpu.matmul %2, %3, %cst {dimension_numbers = #tpu.dot_dimension_numbers<[1], [0], [0], [1], [0, 0, 1, 1], [], []>} : vector<256x32xf32>, vector<32x128xf32>, vector<256x128xf32> -> vector<256x128xf32>
    %c0_5 = arith.constant 0 : index
    %c0_6 = arith.constant 0 : index
    %5 = vector.load %arg4[%c0_5, %c0_6] : memref<256x128xf32, #tpu.memory_space<vmem>>, vector<256x128xf32>
    tpu.vector_store %arg4[%c0_5, %c0_6], %4 {strides = array<i32>} : memref<256x128xf32, #tpu.memory_space<vmem>>, vector<256x128xf32>,
    return
  }
  func.func @transform_0(%arg0: i32, %arg1: memref<256xi32, #tpu.memory_space<smem>>) -> (i32, i32) {
    %c0_i32 = arith.constant 0 : i32
    %c0_i32_0 = arith.constant 0 : i32
    %c0_i32_1 = arith.constant 0 : i32
    return %c0_i32, %c0_i32_0 : i32, i32
  }
  func.func @transform_1(%arg0: i32, %arg1: memref<256xi32, #tpu.memory_space<smem>>) -> (i32, i32) {
    %c0_i32 = arith.constant 0 : i32
    %c0_i32_0 = arith.constant 0 : i32
    %c0_i32_1 = arith.constant 0 : i32
    return %c0_i32, %c0_i32_0 : i32, i32
  }
  func.func @transform_2(%arg0: i32, %arg1: memref<256xi32, #tpu.memory_space<smem>>) -> (i32, i32) {
    %c0_i32 = arith.constant 0 : i32
    %c0_i32_0 = arith.constant 0 : i32
    return %arg0, %c0_i32 : i32, i32
  }
}

</mosaic_0001>

<bundles_post_ra>
// kernel: tpu_custom_call.1
= control target key start
LH: loop header
LB: loop body
LE: loop exit
PB: predicated region body
PF: predicated region fallthrough
CT: control target
= control target key end

     0   :  { %s442_s15 = smov [#allocation4]   ;;  %s519_s0 = inlined_call_operand.vmem [shape: s32[256], index: 0, kind: input, shape index: {}]   ;;  %s520_s1 = inlined_call_operand.vmem [shape: f32[64,32], index: 1, kind: input, shape index: {}]   ;;  %s521_s2 = inlined_call_operand.vmem [shape: f32[32,128], index: 2, kind: input, shape index: {}]   ;;  %s522_s3 = inlined_call_operand.hbm [shape: f32[256,128], index: 3, kind: output, shape index: {}]  }
   0x1   :  { %s9_s14 = sshll.u32 %s519_s0, 4  ;;  %s10_s14 = int_to_ptr.vmem [resolvable:$true] %s9_s14 }
   0x2   :  { %12 = dma.vmem_to_smem %s10_s14, 32, %s442_s15, [#allocation3] }
   0x3   :  { %434 = dma.done.wait [#allocation3], 32 }
   0x4   :  { %435 = vsyncadd [#allocation3], 4294967264 }
   0x5   :  { %15 = sfence }
   0x6   :  { %16 = vsyncpa [#allocation6], 0  ;;  %s438_s16 = smov 0  }
   0x7 LB: > { %s29_s17 = sld [smem:[#allocation4 + %s440_s16]]  ;;  %vm33_vm0 = vcmask 253952   ;;  %s32_s21 = scalar_lea.vmem [#allocation2], %s440_s16  ;;  %s440_s16 = sphi %s438_s16, %s27_s16  }
   0x8   : > { %s27_s16 = sadd.s32 1, %s440_s16  }
   0x9   : > { %p24_p0 = scmp.ge.s32.totalorder %s27_s16, 256  }
   0xa   :  { %v70_v1 = vld [vmem:[%s521_s2 + $0x18] sm:$0xff] (%p24_p0)  ;;  %v69_v2 = vld [vmem:[%s521_s2 + $0x10] sm:$0xff] (%p24_p0)  ;;  %v68_v3 = vld [vmem:[%s521_s2 + $0x8] sm:$0xff] (%p24_p0)  ;;  %vm71_vm1 = vcmask (%p24_p0), 261120   ;;  %s319_s4 = sshll.u32 (%p24_p0), %s522_s3, 4  ;;  %s444_s5 = smov (%p24_p0), 128   ;;  %s320_s4 = int_to_ptr.hbm [resolvable:$true] %s319_s4 }
   0xb   :  { %26 = sbr.rel (!%p24_p0) target bundleno = 7 (0x7), region = 37  ;;  %371 = vmatpush.msra.mxu2 (%p24_p0), %v70_v1  ;;  %372 = vmatpush.msra.mxu3 (%p24_p0), %v70_v1  ;;  %v67_v4 = vld [vmem:[%s521_s2] sm:$0xff] (%p24_p0)  ;;  %s445_s6 = smov (%p24_p0), 8  }
   0xc   :  { %180 = vmatpush.msra.mxu0 (%p24_p0), %v70_v1  ;;  %370 = vmatpush.msra.mxu1 (%p24_p0), %v70_v1 }
   0xd   : > { %s30_s20 = scalar_lea.vmem %s520_s1, %s29_s17  ;;  %374 = vmatpush.msra.mxu2 (%p24_p0), %v69_v2  ;;  %375 = vmatpush.msra.mxu3 (%p24_p0), %v69_v2  ;;  %s443_s1 = smov (%p24_p0), [#allocation5]  }
   0xe   : > { %v31_v0 = vld [vmem:[%s30_s20] sm:$0x1]  ;;  %181 = vmatpush.msra.mxu0 (%p24_p0), %v69_v2  ;;  %373 = vmatpush.msra.mxu1 (%p24_p0), %v69_v2  ;;  %s317_s2 = sshll.u32 (%p24_p0), %s443_s1, 4  ;;  %s318_s2 = int_to_ptr.vmem [resolvable:$true] %s317_s2 }
   0xf   : > { %34 = vst.msk [vmem:[%s32_s21] sm:$0x1] %vm33_vm0, %v31_v0  ;;  %377 = vmatpush.msra.mxu2 (%p24_p0), %v68_v3  ;;  %378 = vmatpush.msra.mxu3 (%p24_p0), %v68_v3 }
  0x10   :  { %182 = vmatpush.msra.mxu0 %v68_v3  ;;  %376 = vmatpush.msra.mxu1 %v68_v3 }
  0x11   :  { %380 = vmatpush.msra.mxu2 %v67_v4  ;;  %381 = vmatpush.msra.mxu3 %v67_v4 }
  0x12   :  { %183 = vmatpush.msra.mxu0 %v67_v4  ;;  %379 = vmatpush.msra.mxu1 %v67_v4 }
  0x16   :  { %v51_v5 = vld [vmem:[#allocation2 + $0x80] sm:$0xff]  ;;  %v52_v9 = vld [vmem:[#allocation2 + $0x88] sm:$0xff]  ;;  %v53_v13 = vld [vmem:[#allocation2 + $0x90] sm:$0xff] }
  0x17   :  { %v59_v6 = vld [vmem:[#allocation2 + $0xc0] sm:$0xff]  ;;  %354 = vmatmul.msk.f32.vlgmr.msra.gmra.mxu2 %vm71_vm1, %v51_v5  ;;  %v60_v10 = vld [vmem:[#allocation2 + $0xc8] sm:$0xff]  ;;  %v61_v14 = vld [vmem:[#allocation2 + $0xd0] sm:$0xff] }
  0x18   :  { %v35_v7 = vld [vmem:[#allocation2] sm:$0xff]  ;;  %362 = vmatmul.msk.f32.vlgmr.msra.gmra.mxu3 %vm71_vm1, %v59_v6  ;;  %v36_v11 = vld [vmem:[#allocation2 + $0x8] sm:$0xff]  ;;  %v37_v15 = vld [vmem:[#allocation2 + $0x10] sm:$0xff] }
  0x19   :  { %v43_v8 = vld [vmem:[#allocation2 + $0x40] sm:$0xff]  ;;  %338 = vmatmul.msk.f32.vlgmr.msra.gmra.mxu0 %vm71_vm1, %v35_v7  ;;  %v44_v12 = vld [vmem:[#allocation2 + $0x48] sm:$0xff]  ;;  %v45_v16 = vld [vmem:[#allocation2 + $0x50] sm:$0xff] }
  0x1a   :  { %346 = vmatmul.msk.f32.vlgmr.msra.gmra.mxu1 %vm71_vm1, %v43_v8  ;;  %v54_v17 = vld [vmem:[#allocation2 + $0x98] sm:$0xff]  ;;  %v55_v21 = vld [vmem:[#allocation2 + $0xa0] sm:$0xff]  ;;  %v56_v25 = vld [vmem:[#allocation2 + $0xa8] sm:$0xff] }
  0x1b   :  { %v62_v18 = vld [vmem:[#allocation2 + $0xd8] sm:$0xff]  ;;  %v63_v22 = vld [vmem:[#allocation2 + $0xe0] sm:$0xff]  ;;  %v64_v26 = vld [vmem:[#allocation2 + $0xe8] sm:$0xff] }
  0x1c   :  { %v38_v19 = vld [vmem:[#allocation2 + $0x18] sm:$0xff]  ;;  %v39_v23 = vld [vmem:[#allocation2 + $0x20] sm:$0xff]  ;;  %v40_v27 = vld [vmem:[#allocation2 + $0x28] sm:$0xff] }
  0x1d   :  { %v46_v20 = vld [vmem:[#allocation2 + $0x58] sm:$0xff]  ;;  %v47_v24 = vld [vmem:[#allocation2 + $0x60] sm:$0xff]  ;;  %v48_v28 = vld [vmem:[#allocation2 + $0x68] sm:$0xff] }
  0x1e   :  { %v57_v29 = vld [vmem:[#allocation2 + $0xb0] sm:$0xff]  ;;  %v58_v33 = vld [vmem:[#allocation2 + $0xb8] sm:$0xff] }
  0x1f   :  { %355 = vmatmul.msk.f32.gmra.mxu2 %vm71_vm1, %v52_v9  ;;  %v65_v30 = vld [vmem:[#allocation2 + $0xf0] sm:$0xff]  ;;  %v66_v34 = vld [vmem:[#allocation2 + $0xf8] sm:$0xff] }
  0x20   :  { %363 = vmatmul.msk.f32.gmra.mxu3 %vm71_vm1, %v60_v10  ;;  %v41_v31 = vld [vmem:[#allocation2 + $0x30] sm:$0xff]  ;;  %v42_v35 = vld [vmem:[#allocation2 + $0x38] sm:$0xff] }
  0x21   :  { %339 = vmatmul.msk.f32.gmra.mxu0 %vm71_vm1, %v36_v11  ;;  %v49_v32 = vld [vmem:[#allocation2 + $0x70] sm:$0xff]  ;;  %v50_v36 = vld [vmem:[#allocation2 + $0x78] sm:$0xff] }
  0x22   :  { %347 = vmatmul.msk.f32.gmra.mxu1 %vm71_vm1, %v44_v12 }
  0x27   :  { %356 = vmatmul.msk.f32.gmra.mxu2 %vm71_vm1, %v53_v13 }
  0x28   :  { %364 = vmatmul.msk.f32.gmra.mxu3 %vm71_vm1, %v61_v14 }
  0x29   :  { %340 = vmatmul.msk.f32.gmra.mxu0 %vm71_vm1, %v37_v15 }
  0x2a   :  { %348 = vmatmul.msk.f32.gmra.mxu1 %vm71_vm1, %v45_v16 }
  0x2f   :  { %357 = vmatmul.msk.f32.gmra.mxu2 %vm71_vm1, %v54_v17 }
  0x30   :  { %365 = vmatmul.msk.f32.gmra.mxu3 %vm71_vm1, %v62_v18 }
  0x31   :  { %341 = vmatmul.msk.f32.gmra.mxu0 %vm71_vm1, %v38_v19 }
  0x32   :  { %349 = vmatmul.msk.f32.gmra.mxu1 %vm71_vm1, %v46_v20 }
  0x37   :  { %358 = vmatmul.msk.f32.gmra.mxu2 %vm71_vm1, %v55_v21 }
  0x38   :  { %366 = vmatmul.msk.f32.gmra.mxu3 %vm71_vm1, %v63_v22 }
  0x39   :  { %342 = vmatmul.msk.f32.gmra.mxu0 %vm71_vm1, %v39_v23 }
  0x3a   :  { %350 = vmatmul.msk.f32.gmra.mxu1 %vm71_vm1, %v47_v24 }
  0x3f   :  { %359 = vmatmul.msk.f32.gmra.mxu2 %vm71_vm1, %v56_v25 }
  0x40   :  { %367 = vmatmul.msk.f32.gmra.mxu3 %vm71_vm1, %v64_v26 }
  0x41   :  { %343 = vmatmul.msk.f32.gmra.mxu0 %vm71_vm1, %v40_v27 }
  0x42   :  { %351 = vmatmul.msk.f32.gmra.mxu1 %vm71_vm1, %v48_v28 }
  0x47   :  { %360 = vmatmul.msk.f32.gmra.mxu2 %vm71_vm1, %v57_v29 }
  0x48   :  { %368 = vmatmul.msk.f32.gmra.mxu3 %vm71_vm1, %v65_v30 }
  0x49   :  { %344 = vmatmul.msk.f32.gmra.mxu0 %vm71_vm1, %v41_v31 }
  0x4a   :  { %352 = vmatmul.msk.f32.gmra.mxu1 %vm71_vm1, %v49_v32 }
  0x4f   :  { %361 = vmatmul.msk.f32.gmra.mxu2 %vm71_vm1, %v58_v33 }
  0x50   :  { %369 = vmatmul.msk.f32.gmra.mxu3 %vm71_vm1, %v66_v34 }
  0x51   :  { %345 = vmatmul.msk.f32.gmra.mxu0 %vm71_vm1, %v42_v35 }
  0x52   :  { %353 = vmatmul.msk.f32.gmra.mxu1 %vm71_vm1, %v50_v36 }
  0x96   :  { %v185_v37 = vpop.f32.mrf.mxu0 }
  0x97   :  { %v209_v38 = vpop.f32.mrf.mxu1  ;;  %281 = vst [vmem:[#allocation5] sm:$0xff] %v185_v37 }
  0x98   :  { %289 = vst [vmem:[#allocation5 + $0x40] sm:$0xff] %v209_v38 }
  0x9a   :  { %v233_v39 = vpop.f32.mrf.mxu2 }
  0x9b   :  { %v257_v40 = vpop.f32.mrf.mxu3  ;;  %297 = vst [vmem:[#allocation5 + $0x80] sm:$0xff] %v233_v39 }
  0x9c   :  { %305 = vst [vmem:[#allocation5 + $0xc0] sm:$0xff] %v257_v40 }
  0x9e   :  { %v188_v41 = vpop.f32.mrf.mxu0 }
  0x9f   :  { %v212_v42 = vpop.f32.mrf.mxu1  ;;  %282 = vst [vmem:[#allocation5 + $0x8] sm:$0xff] %v188_v41 }
  0xa0   :  { %290 = vst [vmem:[#allocation5 + $0x48] sm:$0xff] %v212_v42 }
  0xa2   :  { %v236_v43 = vpop.f32.mrf.mxu2 }
  0xa3   :  { %v260_v44 = vpop.f32.mrf.mxu3  ;;  %298 = vst [vmem:[#allocation5 + $0x88] sm:$0xff] %v236_v43 }
  0xa4   :  { %306 = vst [vmem:[#allocation5 + $0xc8] sm:$0xff] %v260_v44 }
  0xa6   :  { %v191_v45 = vpop.f32.mrf.mxu0 }
  0xa7   :  { %v215_v46 = vpop.f32.mrf.mxu1  ;;  %283 = vst [vmem:[#allocation5 + $0x10] sm:$0xff] %v191_v45 }
  0xa8   :  { %291 = vst [vmem:[#allocation5 + $0x50] sm:$0xff] %v215_v46 }
  0xaa   :  { %v239_v47 = vpop.f32.mrf.mxu2 }
  0xab   :  { %v263_v48 = vpop.f32.mrf.mxu3  ;;  %299 = vst [vmem:[#allocation5 + $0x90] sm:$0xff] %v239_v47 }
  0xac   :  { %307 = vst [vmem:[#allocation5 + $0xd0] sm:$0xff] %v263_v48 }
  0xae   :  { %v194_v49 = vpop.f32.mrf.mxu0 }
  0xaf   :  { %v218_v50 = vpop.f32.mrf.mxu1  ;;  %284 = vst [vmem:[#allocation5 + $0x18] sm:$0xff] %v194_v49 }
  0xb0   :  { %292 = vst [vmem:[#allocation5 + $0x58] sm:$0xff] %v218_v50 }
  0xb2   :  { %v242_v51 = vpop.f32.mrf.mxu2 }
  0xb3   :  { %v266_v52 = vpop.f32.mrf.mxu3  ;;  %300 = vst [vmem:[#allocation5 + $0x98] sm:$0xff] %v242_v51 }
  0xb4   :  { %308 = vst [vmem:[#allocation5 + $0xd8] sm:$0xff] %v266_v52 }
  0xb6   :  { %v197_v53 = vpop.f32.mrf.mxu0 }
  0xb7   :  { %v221_v54 = vpop.f32.mrf.mxu1  ;;  %285 = vst [vmem:[#allocation5 + $0x20] sm:$0xff] %v197_v53 }
  0xb8   :  { %293 = vst [vmem:[#allocation5 + $0x60] sm:$0xff] %v221_v54 }
  0xba   :  { %v245_v55 = vpop.f32.mrf.mxu2 }
  0xbb   :  { %v269_v56 = vpop.f32.mrf.mxu3  ;;  %301 = vst [vmem:[#allocation5 + $0xa0] sm:$0xff] %v245_v55 }
  0xbc   :  { %309 = vst [vmem:[#allocation5 + $0xe0] sm:$0xff] %v269_v56 }
  0xbe   :  { %v200_v57 = vpop.f32.mrf.mxu0 }
  0xbf   :  { %v224_v58 = vpop.f32.mrf.mxu1  ;;  %286 = vst [vmem:[#allocation5 + $0x28] sm:$0xff] %v200_v57 }
  0xc0   :  { %294 = vst [vmem:[#allocation5 + $0x68] sm:$0xff] %v224_v58 }
  0xc2   :  { %v248_v59 = vpop.f32.mrf.mxu2 }
  0xc3   :  { %v272_v60 = vpop.f32.mrf.mxu3  ;;  %302 = vst [vmem:[#allocation5 + $0xa8] sm:$0xff] %v248_v59 }
  0xc4   :  { %310 = vst [vmem:[#allocation5 + $0xe8] sm:$0xff] %v272_v60 }
  0xc6   :  { %v203_v61 = vpop.f32.mrf.mxu0 }
  0xc7   :  { %v227_v62 = vpop.f32.mrf.mxu1  ;;  %287 = vst [vmem:[#allocation5 + $0x30] sm:$0xff] %v203_v61 }
  0xc8   :  { %295 = vst [vmem:[#allocation5 + $0x70] sm:$0xff] %v227_v62 }
  0xca   :  { %v251_v63 = vpop.f32.mrf.mxu2 }
  0xcb   :  { %v275_v0 = vpop.f32.mrf.mxu3  ;;  %303 = vst [vmem:[#allocation5 + $0xb0] sm:$0xff] %v251_v63 }
  0xcc   :  { %311 = vst [vmem:[#allocation5 + $0xf0] sm:$0xff] %v275_v0 }
  0xce   :  { %v206_v1 = vpop.f32.mrf.mxu0 }
  0xcf   :  { %v230_v2 = vpop.f32.mrf.mxu1  ;;  %288 = vst [vmem:[#allocation5 + $0x38] sm:$0xff] %v206_v1 }
  0xd0   :  { %296 = vst [vmem:[#allocation5 + $0x78] sm:$0xff] %v230_v2 }
  0xd2   :  { %v254_v3 = vpop.f32.mrf.mxu2 }
  0xd3   :  { %v278_v4 = vpop.f32.mrf.mxu3  ;;  %304 = vst [vmem:[#allocation5 + $0xb8] sm:$0xff] %v254_v3 }
  0xd4   :  { %312 = vst [vmem:[#allocation5 + $0xf8] sm:$0xff] %v278_v4 }
  0xd5   :  { %325 = dma.vmem_to_hbm [thread:$0]  %s318_s2, 4096, %s320_s4, [#allocation6], %s444_s5, %s444_s5, %s445_s6  }
  0xd6   :  { %436 = dma.done.wait [#allocation6], 4096  }
  0xd7   :  { %437 = vsyncadd [#allocation6], 4294963200 }
  0xd8   :  { %330 = vsyncpa [#allocation6], 1 }

</bundles_post_ra>
